<compile_context>
chip_gen: v7x
topology: tpu7x:2x2x1
jax: 0.10.0
libtpu: 0.0.40
codegen_flags: <defaults>
</compile_context>

<pallas_src>
import functools

import jax
import jax.numpy as jnp
from jax.experimental import pallas as pl
from jax.experimental.pallas import tpu as pltpu


def _round_up(x: int, m: int) -> int:
    return ((x + m - 1) // m) * m


def _gat_kernel(x_ref, nf_ref, wl_ref, ws_ref, out_ref):
    """One TM-row tile: out = x @ wl_c + neigh_flat @ ws_c  (f32 accumulation).

    x_ref : (TM, D_in)        node-feature tile (bf16)
    nf_ref: (TM, K*D_in)      flattened neighbor-feature tile (bf16)
    wl_ref: (D_in, W)         lin_l weight, zero-padded to W lanes if concat
    ws_ref: (K*D_in, W)       lin_r weight with aggr weights folded, zero-padded if concat
    out_ref: (TM, W)          W = D_out (add) or 2*D_out (concat) — single dense store
    """
    xl = jnp.dot(x_ref[...], wl_ref[...], preferred_element_type=jnp.float32)
    nr = jnp.dot(nf_ref[...], ws_ref[...], preferred_element_type=jnp.float32)
    out_ref[...] = (xl + nr).astype(out_ref.dtype)


def gat_forward(x, neigh_x, w_aggr1, w_aggr2, w_l, w_r, concat=False,
                block_m=2048, compute_dtype=jnp.bfloat16, out_dtype=jnp.float32):
    """
    x:        (T, N, D_in)
    neigh_x:  (T, N, K, D_in)  with K in {5, 2}
    w_aggr1:  (1, 5)   nn.Linear(5, 1).weight
    w_aggr2:  (1, 2)   nn.Linear(2, 1).weight
    w_l, w_r: (D_out, D_in)    nn.Linear(in_dim, out_dim, bias=False).weight
    """
    T, N, D_in = x.shape
    K = neigh_x.shape[2]
    D_out = w_l.shape[0]
    M = T * N

    if K == 5:
        w_aggr = w_aggr1.reshape(-1)
    elif K == 2:
        w_aggr = w_aggr2.reshape(-1)
    else:
        raise ValueError("GAT aggregator only supports K=5 or K=2 neighbors")

    # Contiguous, transpose-free layouts.  astype is a no-op when callers already
    # produce bf16 activations (the recommended path).
    x2d = x.reshape(M, D_in).astype(compute_dtype)
    neigh_flat = neigh_x.reshape(M, K * D_in).astype(compute_dtype)

    # Fold the K aggregation weights into lin_r:  row-block k = w_aggr[k] * W_r^T.
    wl_t = jnp.asarray(w_l, jnp.float32).T                              # (D_in, D_out)
    w_stack = (
        w_aggr.astype(jnp.float32)[:, None, None]
        * jnp.asarray(w_r, jnp.float32).T[None, :, :]
    ).reshape(K * D_in, D_out)                                          # (K*D_in, D_out)

    if concat:
        # Zero-pad the weights so each dot already produces the full 2*D_out lanes;
        # the kernel then does a single add + one lane-dense unmasked store.
        out_width = 2 * D_out
        wl_c = jnp.concatenate([wl_t, jnp.zeros((D_in, D_out), jnp.float32)], axis=1)
        ws_c = jnp.concatenate([jnp.zeros((K * D_in, D_out), jnp.float32), w_stack],
                               axis=1)
    else:
        out_width = D_out
        wl_c = wl_t
        ws_c = w_stack
    wl_c = wl_c.astype(compute_dtype)
    ws_c = ws_c.astype(compute_dtype)

    # Tile over M.  Multiple of 16 (bf16 sublane packing), capped by block_m.
    tm = min(_round_up(block_m, 16), _round_up(M, 16))
    if pl.cdiv(M, tm) == 1 and M > 1024:
        # Make sure both TensorCores (v7x) get work under "parallel" semantics.
        tm = _round_up(pl.cdiv(M, 2), 16)
    grid = (pl.cdiv(M, tm),)   # ragged last block handled by Pallas; no jnp.pad pass.

    # VMEM estimate with lane padding (last dim padded to 128) and double-buffering.
    in_elt = jnp.dtype(compute_dtype).itemsize
    out_elt = jnp.dtype(out_dtype).itemsize
    lane = lambda n: _round_up(n, 128)
    tile_bytes = (2 * tm * (lane(D_in) + lane(K * D_in)) * in_elt
                  + 2 * tm * lane(out_width) * out_elt)
    weight_bytes = (2 * (_round_up(D_in, 16) + _round_up(K * D_in, 16))
                    * lane(out_width) * in_elt)
    vmem_limit = int(min(max(tile_bytes + weight_bytes + (4 << 20), 16 << 20), 100 << 20))

    cost = pl.CostEstimate(
        flops=2 * M * (K + 1) * D_in * out_width,
        transcendentals=0,
        bytes_accessed=(in_elt * M * (K + 1) * D_in
                        + out_elt * M * out_width
                        + weight_bytes),
    )

    # TODO(synk): if xprof still shows exposed input DMA at large TM, add
    # pipeline_mode=pl.Buffered(3) on the neigh-tile spec; bf16 output would trim
    # another ~12% of HBM bytes if downstream tolerates it.
    out = pl.pallas_call(
        _gat_kernel,
        out_shape=jax.ShapeDtypeStruct((M, out_width), out_dtype),
        grid_spec=pltpu.PrefetchScalarGridSpec(
            num_scalar_prefetch=0,
            grid=grid,
            in_specs=[
                pl.BlockSpec((tm, D_in), lambda i: (i, 0)),          # x tile
                pl.BlockSpec((tm, K * D_in), lambda i: (i, 0)),      # neigh tile
                pl.BlockSpec((D_in, out_width), lambda i: (0, 0)),   # wl_c (resident)
                pl.BlockSpec((K * D_in, out_width), lambda i: (0, 0)),  # ws_c (resident)
            ],
            out_specs=pl.BlockSpec((tm, out_width), lambda i: (i, 0)),
        ),
        compiler_params=pltpu.CompilerParams(
            dimension_semantics=("parallel",),
            vmem_limit_bytes=vmem_limit,
        ),
        cost_estimate=cost,
    )(x2d, neigh_flat, wl_c, ws_c)

    return out


def gat_reference(x, neigh_x, w_aggr1, w_aggr2, w_l, w_r, concat=False):
    """Pure-JAX (f32) reference mirroring the PyTorch forward."""
    T, N, D_in = x.shape
    K = neigh_x.shape[2]
    w_aggr = (w_aggr1 if K == 5 else w_aggr2).reshape(-1).astype(jnp.float32)
    X = x.reshape(T * N, D_in).astype(jnp.float32)
    NX = jnp.einsum("mkd,k->md",
                    neigh_x.reshape(T * N, K, D_in).astype(jnp.float32), w_aggr)
    xl = X @ jnp.asarray(w_l, jnp.float32).T
    nr = NX @ jnp.asarray(w_r, jnp.float32).T
    return jnp.concatenate([xl, nr], axis=1) if concat else xl + nr


if __name__ == "__main__":
    D_in, D_out = 32, 64
    key = jax.random.PRNGKey(0)
    k_x, k_n, k_a1, k_a2, k_l, k_r, k_x2, k_n2, k_x3, k_n3 = jax.random.split(key, 10)

    # Deterministic "parameter" init (shapes from nn.Linear in __init__), f32.
    w_aggr1 = jax.random.normal(k_a1, (1, 5), dtype=jnp.float32) * 0.4   # aggr1.weight
    w_aggr2 = jax.random.normal(k_a2, (1, 2), dtype=jnp.float32) * 0.7   # aggr2.weight
    w_l = jax.random.normal(k_l, (D_out, D_in), dtype=jnp.float32) * (1.0 / D_in ** 0.5)
    w_r = jax.random.normal(k_r, (D_out, D_in), dtype=jnp.float32) * (1.0 / D_in ** 0.5)

    TOL = 3e-2   # bf16 inputs/weights vs f32 reference

    # Case 1: K=5, concat=False (default module configuration).  bf16 activations
    # are produced upstream (cast once here), as recommended.
    T, N, K = 2, 8, 5
    x = jax.random.normal(k_x, (T, N, D_in), dtype=jnp.float32).astype(jnp.bfloat16)
    neigh_x = jax.random.normal(k_n, (T, N, K, D_in), dtype=jnp.float32).astype(jnp.bfloat16)
    out = jax.block_until_ready(
        gat_forward(x, neigh_x, w_aggr1, w_aggr2, w_l, w_r, concat=False))
    ref = gat_reference(x, neigh_x, w_aggr1, w_aggr2, w_l, w_r, concat=False)
    assert out.shape == (T * N, D_out)
    assert jnp.allclose(out, ref, atol=TOL, rtol=TOL), "mismatch (K=5, add)"

    # Case 2: K=5, concat=True — lane-dense 128-wide output via block-diag weights.
    out_c = jax.block_until_ready(
        gat_forward(x, neigh_x, w_aggr1, w_aggr2, w_l, w_r, concat=True))
    ref_c = gat_reference(x, neigh_x, w_aggr1, w_aggr2, w_l, w_r, concat=True)
    assert out_c.shape == (T * N, 2 * D_out)
    assert jnp.allclose(out_c, ref_c, atol=TOL, rtol=TOL), "mismatch (K=5, concat)"

    # Case 3: K=2 aggregator, M = 15 (single ragged block, no wrapper pad).
    T2, N2, K2 = 3, 5, 2
    x2 = jax.random.normal(k_x2, (T2, N2, D_in), dtype=jnp.float32).astype(jnp.bfloat16)
    neigh_x2 = jax.random.normal(k_n2, (T2, N2, K2, D_in),
                                 dtype=jnp.float32).astype(jnp.bfloat16)
    out2 = jax.block_until_ready(
        gat_forward(x2, neigh_x2, w_aggr1, w_aggr2, w_l, w_r, concat=False))
    ref2 = gat_reference(x2, neigh_x2, w_aggr1, w_aggr2, w_l, w_r, concat=False)
    assert out2.shape == (T2 * N2, D_out)
    assert jnp.allclose(out2, ref2, atol=TOL, rtol=TOL), "mismatch (K=2, ragged M)"

    # Case 4: multi-block grid with a ragged last block (small block_m to exercise it).
    T3, N3, K3 = 3, 37, 5   # M = 111, tm = 64 -> grid = 2, last block has 47 rows
    x3 = jax.random.normal(k_x3, (T3, N3, D_in), dtype=jnp.float32).astype(jnp.bfloat16)
    neigh_x3 = jax.random.normal(k_n3, (T3, N3, K3, D_in),
                                 dtype=jnp.float32).astype(jnp.bfloat16)
    out3 = jax.block_until_ready(
        gat_forward(x3, neigh_x3, w_aggr1, w_aggr2, w_l, w_r, concat=False, block_m=64))
    ref3 = gat_reference(x3, neigh_x3, w_aggr1, w_aggr2, w_l, w_r, concat=False)
    assert out3.shape == (T3 * N3, D_out)
    assert jnp.allclose(out3, ref3, atol=TOL, rtol=TOL), "mismatch (K=5, multi-block ragged)"

    print("KERNEL_OK")
</pallas_src>

<mosaic_0001>
module attributes {stable_mosaic.version = 11 : i64} {
  func.func @_gat_kernel(%arg0: i32, %arg1: memref<16x32xbf16, #tpu.memory_space<vmem>>, %arg2: memref<16x160xbf16, #tpu.memory_space<vmem>>, %arg3: memref<32x64xbf16, #tpu.memory_space<vmem>>, %arg4: memref<160x64xbf16, #tpu.memory_space<vmem>>, %arg5: memref<16x64xf32, #tpu.memory_space<vmem>>) attributes {dimension_semantics = [#tpu.dimension_semantics<parallel>], iteration_bounds = array<i64: 1>, scalar_prefetch = 0 : i64, scratch_operands = 0 : i64, tpu.core_type = #tpu.core_type<tc>, window_params = [{transform_indices = @transform_0, window_bounds = array<i64: 16, 32>}, {transform_indices = @transform_1, window_bounds = array<i64: 16, 160>}, {pipeline_mode = #tpu.pipeline_mode<synchronous>, transform_indices = @transform_2, window_bounds = array<i64: 32, 64>}, {pipeline_mode = #tpu.pipeline_mode<synchronous>, transform_indices = @transform_3, window_bounds = array<i64: 160, 64>}, {transform_indices = @transform_4, window_bounds = array<i64: 16, 64>}]} {
    %c0 = arith.constant 0 : index
    %c0_0 = arith.constant 0 : index
    %0 = vector.load %arg1[%c0, %c0_0] : memref<16x32xbf16, #tpu.memory_space<vmem>>, vector<16x32xbf16>
    %c0_1 = arith.constant 0 : index
    %c0_2 = arith.constant 0 : index
    %1 = vector.load %arg3[%c0_1, %c0_2] : memref<32x64xbf16, #tpu.memory_space<vmem>>, vector<32x64xbf16>
    %cst = arith.constant dense<0.000000e+00> : vector<16x64xf32>
    %2 = tpu.matmul %0, %1, %cst {dimension_numbers = #tpu.dot_dimension_numbers<[1], [0], [0], [1], [0, 0, 1, 1], [], []>} : vector<16x32xbf16>, vector<32x64xbf16>, vector<16x64xf32> -> vector<16x64xf32>
    %c0_3 = arith.constant 0 : index
    %c0_4 = arith.constant 0 : index
    %3 = vector.load %arg2[%c0_3, %c0_4] : memref<16x160xbf16, #tpu.memory_space<vmem>>, vector<16x160xbf16>
    %c0_5 = arith.constant 0 : index
    %c0_6 = arith.constant 0 : index
    %4 = vector.load %arg4[%c0_5, %c0_6] : memref<160x64xbf16, #tpu.memory_space<vmem>>, vector<160x64xbf16>
    %cst_7 = arith.constant dense<0.000000e+00> : vector<16x64xf32>
    %5 = tpu.matmul %3, %4, %cst_7 {dimension_numbers = #tpu.dot_dimension_numbers<[1], [0], [0], [1], [0, 0, 1, 1], [], []>} : vector<16x160xbf16>, vector<160x64xbf16>, vector<16x64xf32> -> vector<16x64xf32>
    %6 = arith.addf %2, %5 : vector<16x64xf32>
    %c0_8 = arith.constant 0 : index
    %c0_9 = arith.constant 0 : index
    %7 = vector.load %arg5[%c0_8, %c0_9] : memref<16x64xf32, #tpu.memory_space<vmem>>, vector<16x64xf32>
    tpu.vector_store %arg5[%c0_8, %c0_9], %6 {strides = array<i32>} : memref<16x64xf32, #tpu.memory_space<vmem>>, vector<16x64xf32>,
    return
  }
  func.func @transform_0(%arg0: i32) -> (i32, i32) {
    %c0_i32 = arith.constant 0 : i32
    %c0_i32_0 = arith.constant 0 : i32
    return %arg0, %c0_i32 : i32, i32
  }
  func.func @transform_1(%arg0: i32) -> (i32, i32) {
    %c0_i32 = arith.constant 0 : i32
    %c0_i32_0 = arith.constant 0 : i32
    return %arg0, %c0_i32 : i32, i32
  }
  func.func @transform_2(%arg0: i32) -> (i32, i32) {
    %c0_i32 = arith.constant 0 : i32
    %c0_i32_0 = arith.constant 0 : i32
    %c0_i32_1 = arith.constant 0 : i32
    return %c0_i32, %c0_i32_0 : i32, i32
  }
  func.func @transform_3(%arg0: i32) -> (i32, i32) {
    %c0_i32 = arith.constant 0 : i32
    %c0_i32_0 = arith.constant 0 : i32
    %c0_i32_1 = arith.constant 0 : i32
    return %c0_i32, %c0_i32_0 : i32, i32
  }
  func.func @transform_4(%arg0: i32) -> (i32, i32) {
    %c0_i32 = arith.constant 0 : i32
    %c0_i32_0 = arith.constant 0 : i32
    return %arg0, %c0_i32 : i32, i32
  }
}

</mosaic_0001>

<bundles_post_ra>
// kernel: tpu_custom_call.1
= control target key start
LH: loop header
LB: loop body
LE: loop exit
PB: predicated region body
PF: predicated region fallthrough
CT: control target
= control target key end

     0   :  { %v317_v1 = vmov 0   ;;  %v318_v3 = vmov 0.0   ;;  %vm319_vm0 = vmmov 0   ;;  %vm116_vm1 = vcmask 261120   ;;  %s405_s0 = inlined_call_operand.vmem [shape: bf16[16,32], index: 0, kind: input, shape index: {}]   ;;  %s406_s1 = inlined_call_operand.vmem [shape: bf16[16,160], index: 1, kind: input, shape index: {}]   ;;  %s407_s2 = inlined_call_operand.vmem [shape: bf16[32,64], index: 2, kind: input, shape index: {}]   ;;  %s408_s3 = inlined_call_operand.vmem [shape: bf16[160,64], index: 3, kind: input, shape index: {}]   ;;  %s409_s4 = inlined_call_operand.hbm [shape: f32[16,64], index: 4, kind: output, shape index: {}]  }
   0x1   :  { %v277_v0 = vld [vmem:[%s408_s3] sm:$0xff]   ;;  %120 = vmatprep.subr.bf16.mxu1 %v317_v1  ;;  %v278_v2 = vld [vmem:[%s408_s3 + $0x8] sm:$0xff]   ;;  %261 = vmatprep.subr.bf16.mxu0 %v318_v3  ;;  %v279_v4 = vld [vmem:[%s408_s3 + $0x10] sm:$0xff]  }
   0x2   :  { %121 = vmatpush1.bf16.msra.mxu1 %v277_v0  ;;  %265 = vmatprep.mubr.msk.bf16.mxu0 %vm319_vm0, %v318_v3  ;;  %v285_v5 = vld [vmem:[%s407_s2] sm:$0xff]   ;;  %v280_v6 = vld [vmem:[%s408_s3 + $0x18] sm:$0xff]   ;;  %v287_v7 = vld [vmem:[%s407_s2 + $0x8] sm:$0xff]  }
   0x3   :  { %122 = vmatprep.subr.bf16.mxu1 %v317_v1  ;;  %262 = vmatpush3.bf16.msra.mxu0 %v285_v5  ;;  %v289_v8 = vld [vmem:[%s405_s0] sm:$0xff]  }
   0x4   :  { %263 = vmatprep.subr.bf16.mxu0 %v318_v3  ;;  %v281_v9 = vld [vmem:[%s408_s3 + $0x20] sm:$0xff]  }
   0x5   :  { %v292_v10 = vld [vmem:[%s406_s1 + $0x4] ss:$8 sps:$4 sm:$0xff]  }
   0x6   :  { %123 = vmatpush1.bf16.msra.mxu1 %v278_v2 }
   0x7   :  { %124 = vmatprep.subr.bf16.mxu1 %v317_v1  ;;  %264 = vmatpush3.bf16.msra.mxu0 %v287_v7 }
   0xa   :  { %125 = vmatpush1.bf16.msra.mxu1 %v279_v4 }
   0xb   :  { %126 = vmatprep.subr.bf16.mxu1 %v317_v1 }
   0xe   :  { %127 = vmatpush1.bf16.msra.mxu1 %v280_v6 }
   0xf   :  { %9 = vsyncpa [#allocation3], 0  ;;  %128 = vmatprep.subr.bf16.mxu1 %v317_v1  ;;  %253 = vmatprep.mubr.msk.bf16.mxu1 %vm116_vm1, %v292_v10  ;;  %v282_v11 = vld [vmem:[%s408_s3 + $0x28] sm:$0xff]   ;;  %v283_v12 = vld [vmem:[%s408_s3 + $0x30] sm:$0xff]   ;;  %s320_s17 = smov [#allocation2]   ;;  %vm222_vm2 = vcmask 523264  }
  0x10   :  { %266 = vmatmul.mubr.msk.bf16.vlgmr.msra.gmra.mrb[0].mxu0 %vm116_vm1, %v289_v8  ;;  %v284_v13 = vld [vmem:[%s408_s3 + $0x38] sm:$0xff]   ;;  %v286_v14 = vld [vmem:[%s408_s3 + $0x40] sm:$0xff]   ;;  %v288_v15 = vld [vmem:[%s408_s3 + $0x48] sm:$0xff]   ;;  %s230_s18 = sshll.u32 %s320_s17, 4  ;;  %s231_s18 = int_to_ptr.vmem [resolvable:$true] %s230_s18 }
  0x11   :  { %v290_v16 = vld [vmem:[%s406_s1] ss:$8 sps:$4 sm:$0xff]   ;;  %s293_s3 = scalar_lea.vmem %s231_s18, 256  ;;  %p298_p1 = scmp.lt.s32.totalorder %s231_s18, %s231_s18 }
  0x12   :  { %129 = vmatpush1.bf16.msra.mxu1 %v281_v9  ;;  %p294_p0 = scmp.ne.s32.totalorder %s231_s18, %s293_s3  ;;  %p299_p2 = scmp.lt.s32.totalorder %s293_s3, %s293_s3 }
  0x13   :  { %130 = vmatprep.subr.bf16.mxu1 %v317_v1 }
  0x14   :  { %p300_p3 = por %p299_p2, %p298_p1 }
  0x16   :  { %131 = vmatpush1.bf16.msra.mxu1 %v282_v11  ;;  %p301_p4 = pnand %p300_p3, %p294_p0 }
  0x17   :  { %132 = vmatprep.subr.bf16.mxu1 %v317_v1 }
  0x1a   :  { %133 = vmatpush1.bf16.msra.mxu1 %v283_v12 }
  0x1b   :  { %134 = vmatprep.subr.bf16.mxu1 %v317_v1 }
  0x1e   :  { %135 = vmatpush1.bf16.msra.mxu1 %v284_v13 }
  0x1f   :  { %136 = vmatprep.subr.bf16.mxu1 %v317_v1 }
  0x22   :  { %137 = vmatpush1.bf16.msra.mxu1 %v286_v14 }
  0x23   :  { %138 = vmatprep.subr.bf16.mxu1 %v317_v1 }
  0x26   :  { %139 = vmatpush1.bf16.msra.mxu1 %v288_v15 }
  0x29   :  { %153 = vmatmul.mubr.bf16.vlgmr.msra.gmra.mrb[0].mxu1 %v290_v16 }
  0xe3   :  { %v215_v17 = vpop.f32.mrb[0].mxu0 }
  0xe4   :  { %v267_v18 = vpop.f32.mrb[1].mxu0 }
  0xe5   :  { %v218_v19 = vpop.f32.mrb[2].mxu0 }
  0xe6   :  { %v268_v20 = vpop.f32.mrb[3].mxu0 }
  0xfc   :  { %v154_v21 = vpop.f32.mrb[0].mxu1 }
  0xfd   :  { %v216_v22 = vadd.f32 %v215_v17, %v154_v21  ;;  %v156_v23 = vpop.f32.mrb[1].mxu1 }
  0xfe   :  { %v157_v24 = vpop.f32.mrb[2].mxu1 }
  0xff   :  { %223 = vst.msk [vmem:[#allocation2] sm:$0xff] %vm222_vm2, %v216_v22  ;;  %v219_v25 = vadd.f32 %v218_v19, %v157_v24  ;;  %v159_v26 = vpop.f32.mrb[3].mxu1 }
 0x101   :  { %224 = vst.msk [vmem:[#allocation2 + $0x8] sm:$0xff] %vm222_vm2, %v219_v25 }
 0x102   :  { %304 = shalt.err (!%p301_p4)
}
 0x103   :  { %s305_s20 = scalar_lea.hbm %s409_s4, 256 }
 0x104   :  { %p306_p5 = scmp.ne.s32.totalorder %s409_s4, %s305_s20  ;;  %p309_p6 = scmp.lt.u32.totalorder %s305_s20, %s409_s4 }
 0x106   :  { %p311_p7 = pnand %p309_p6, %p306_p5 }
 0x108   :  { %314 = shalt.err (!%p311_p7)
}
 0x109   :  { %s321_s25 = smov 128   ;;  %s322_s26 = smov 8  }
 0x10a   :  { %236 = dma.vmem_to_hbm [thread:$0]  %s231_s18, 256, %s409_s4, [#allocation3], %s321_s25, %s321_s25, %s322_s26  }
 0x10b   :  { %315 = dma.done.wait [#allocation3], 256  }
 0x10c   :  { %316 = vsyncadd [#allocation3], 4294967040 }
 0x10d   :  { %240 = vsyncpa [#allocation3], 1 }

</bundles_post_ra>
